<compile_context>
chip_gen: v7x
topology: tpu7x:2x2x1
jax: 0.10.0
libtpu: 0.0.40
codegen_flags: <defaults>
</compile_context>

<pallas_src>
import math

import jax
import jax.numpy as jnp
from jax.experimental import pallas as pl
from jax.experimental.pallas import tpu as pltpu


def _drop_path_kernel(scale_ref, x_ref, o_ref):
    # scale_ref: VMEM (tile_b, 1) float32, per-sample 0 or 1/keep_prob
    # x_ref/o_ref: VMEM (tile_b, tile_l) tiles of the flattened input/output
    o_ref[...] = (x_ref[...].astype(jnp.float32) * scale_ref[...]).astype(o_ref.dtype)


def _choose_tiles(B, L, itemsize, target_bytes=2 * 1024 * 1024):
    """Pick (tile_b, tile_l, L_pad): lane-dense tiles that evenly divide the
    (possibly 128-padded) lane axis and keep each buffer <= ~target_bytes."""
    tile_b = 8 if (B % 8 == 0) else B          # satisfies the (8, 128) rule
    l128 = pl.cdiv(L, 128) * 128               # pad lanes to a multiple of 128
    max_tile_l = max(128, (target_bytes // (tile_b * itemsize)) // 128 * 128)
    tile_l = min(max_tile_l, l128)
    # shrink to an exact divisor of the padded lane axis (128 always divides)
    while l128 % tile_l != 0:
        tile_l -= 128
    return tile_b, tile_l, l128


def drop_path_pallas(x, scale):
    """Apply DropPath given a precomputed per-sample float32 scale of shape (B,)."""
    B = x.shape[0]
    L = math.prod(x.shape[1:])
    x_flat = x.reshape(B, L)

    tile_b, tile_l, L_pad = _choose_tiles(B, L, jnp.dtype(x.dtype).itemsize)
    if L_pad > L:
        x_flat = jnp.pad(x_flat, ((0, 0), (0, L_pad - L)))

    scale_2d = scale.astype(jnp.float32).reshape(B, 1)

    out_flat = pl.pallas_call(
        _drop_path_kernel,
        out_shape=jax.ShapeDtypeStruct((B, L_pad), x.dtype),
        grid_spec=pltpu.PrefetchScalarGridSpec(
            num_scalar_prefetch=0,
            grid=(B // tile_b, L_pad // tile_l),
            in_specs=[
                pl.BlockSpec((tile_b, 1), lambda i, j: (i, 0)),       # scale
                pl.BlockSpec((tile_b, tile_l), lambda i, j: (i, j)),  # x
            ],
            out_specs=pl.BlockSpec((tile_b, tile_l), lambda i, j: (i, j)),
        ),
        compiler_params=pltpu.CompilerParams(
            dimension_semantics=("parallel", "parallel"),
        ),
    )(scale_2d, x_flat)

    return out_flat[:, :L].reshape(x.shape)


class DropPath:
    """JAX/Pallas port of the PyTorch DropPath module (forward only)."""

    def __init__(self, drop_prob=None):
        self.drop_prob = drop_prob
        self.training = True

    def __call__(self, x, key):
        drop_prob = 0.0 if self.drop_prob is None else float(self.drop_prob)
        if drop_prob == 0.0 or not self.training:
            return x
        keep_prob = 1.0 - drop_prob  # NOTE: drop_prob == 1.0 gives inf scale, same as PyTorch
        B = x.shape[0]
        # random_tensor = floor(keep_prob + U[0,1))  -> Bernoulli(keep_prob), in float32
        rand = jax.random.uniform(key, (B,), dtype=jnp.float32)
        mask = jnp.floor(keep_prob + rand)
        scale = mask * (1.0 / keep_prob)          # 0.0 or 1/keep_prob, float32
        return drop_path_pallas(x, scale)


if __name__ == "__main__":
    key = jax.random.PRNGKey(0)
    kx, kmask = jax.random.split(key)

    B, N, D = 2, 8, 32
    x = jax.random.normal(kx, (B, N, D), dtype=jnp.float32)

    module = DropPath(drop_prob=0.5)
    module.training = True

    out = jax.block_until_ready(module(x, kmask))

    # Reference (pure JAX), same mask construction.
    keep_prob = 0.5
    rand = jax.random.uniform(kmask, (B,), dtype=jnp.float32)
    mask = jnp.floor(keep_prob + rand)
    ref = x * (mask * (1.0 / keep_prob))[:, None, None]
    assert jnp.allclose(out, ref, atol=1e-6, rtol=1e-6), "mismatch vs reference"

    # Non-128-multiple trailing size exercises the lane-padding path.
    x2 = jax.random.normal(kx, (2, 8, 24), dtype=jnp.float32)
    out2 = jax.block_until_ready(module(x2, kmask))
    ref2 = x2 * (mask * (1.0 / keep_prob))[:, None, None]
    assert jnp.allclose(out2, ref2, atol=1e-6, rtol=1e-6), "padded-path mismatch"

    # Eval mode: identity.
    module.training = False
    out_eval = jax.block_until_ready(module(x, kmask))
    assert jnp.allclose(out_eval, x), "eval mode should be identity"

    print("KERNEL_OK")
</pallas_src>

<mosaic_0001>
module attributes {stable_mosaic.version = 11 : i64} {
  func.func @_drop_path_kernel(%arg0: i32, %arg1: i32, %arg2: memref<2x1xf32, #tpu.memory_space<vmem>>, %arg3: memref<2x256xf32, #tpu.memory_space<vmem>>, %arg4: memref<2x256xf32, #tpu.memory_space<vmem>>) attributes {dimension_semantics = [#tpu.dimension_semantics<parallel>, #tpu.dimension_semantics<parallel>], iteration_bounds = array<i64: 1, 1>, scalar_prefetch = 0 : i64, scratch_operands = 0 : i64, tpu.core_type = #tpu.core_type<tc>, window_params = [{transform_indices = @transform_0, window_bounds = array<i64: 2, 1>}, {transform_indices = @transform_1, window_bounds = array<i64: 2, 256>}, {transform_indices = @transform_2, window_bounds = array<i64: 2, 256>}]} {
    %c0 = arith.constant 0 : index
    %c0_0 = arith.constant 0 : index
    %0 = vector.load %arg3[%c0, %c0_0] : memref<2x256xf32, #tpu.memory_space<vmem>>, vector<2x256xf32>
    %c0_1 = arith.constant 0 : index
    %c0_2 = arith.constant 0 : index
    %1 = vector.load %arg2[%c0_1, %c0_2] : memref<2x1xf32, #tpu.memory_space<vmem>>, vector<2x1xf32>
    %2 = vector.broadcast %1 : vector<2x1xf32> to vector<2x256xf32>
    %3 = arith.mulf %0, %2 : vector<2x256xf32>
    %c0_3 = arith.constant 0 : index
    %c0_4 = arith.constant 0 : index
    %4 = vector.load %arg4[%c0_3, %c0_4] : memref<2x256xf32, #tpu.memory_space<vmem>>, vector<2x256xf32>
    tpu.vector_store %arg4[%c0_3, %c0_4], %3 {strides = array<i32>} : memref<2x256xf32, #tpu.memory_space<vmem>>, vector<2x256xf32>,
    return
  }
  func.func @transform_0(%arg0: i32, %arg1: i32) -> (i32, i32) {
    %c0_i32 = arith.constant 0 : i32
    %c0_i32_0 = arith.constant 0 : i32
    return %arg0, %c0_i32 : i32, i32
  }
  func.func @transform_1(%arg0: i32, %arg1: i32) -> (i32, i32) {
    %c0_i32 = arith.constant 0 : i32
    return %arg0, %arg1 : i32, i32
  }
  func.func @transform_2(%arg0: i32, %arg1: i32) -> (i32, i32) {
    %c0_i32 = arith.constant 0 : i32
    return %arg0, %arg1 : i32, i32
  }
}

</mosaic_0001>

<bundles_post_ra>
// kernel: tpu_custom_call.1
= control target key start
LH: loop header
LB: loop body
LE: loop exit
PB: predicated region body
PF: predicated region fallthrough
CT: control target
= control target key end

     0   :  { %v70_v1 = vmov 0   ;;  %s106_s0 = inlined_call_operand.vmem [shape: f32[2,1], index: 0, kind: input, shape index: {}]   ;;  %s107_s1 = inlined_call_operand.vmem [shape: f32[2,256], index: 1, kind: input, shape index: {}]   ;;  %s108_s2 = inlined_call_operand.hbm [shape: f32[2,256], index: 2, kind: output, shape index: {}]  }
   0x1   :  { %v13_v0 = vld [vmem:[%s106_s0] sm:$0x3]  ;;  %45 = vset.pattern.permute.xlu0 %v70_v1 }
   0x2   :  { %7 = vsyncpa [#allocation3], 0  ;;  %16 = vperm.xlu0 %45, %v13_v0   ;;  %v71_v2 = vmov 269488144   ;;  %v21_v4 = vlaneseq  ;;  %v12_v9 = vld [vmem:[%s107_s1] sm:$0xf] }
   0x3   :  { %v19_v3 = vunpack.c.l.s4 %v71_v2  ;;  %s72_s13 = smov [#allocation2]  }
   0x4   :  { %v22_v6 = vshrl.u32 %v21_v4, 7  ;;  %s34_s14 = sshll.u32 %s72_s13, 4  ;;  %s35_s14 = int_to_ptr.vmem [resolvable:$true] %s34_s14 }
   0x5   :  { %v20_v5 = vunpack.c.0.s8 %v19_v3  ;;  %s46_s0 = scalar_lea.vmem %s35_s14, 64  ;;  %p51_p1 = scmp.lt.s32.totalorder %s35_s14, %s35_s14 }
   0x6   :  { %p47_p0 = scmp.ne.s32.totalorder %s35_s14, %s46_s0  ;;  %p52_p2 = scmp.lt.s32.totalorder %s46_s0, %s46_s0 }
   0x7   :  { %v23_v7 = vsub.s32 %v20_v5, %v22_v6 }
   0x8   :  { %p53_p3 = por %p52_p2, %p51_p1 }
   0xa   :  { %p54_p4 = pnand %p53_p3, %p47_p0 }
  0x81   :  { %v17_v8 = vpop.permute.xlu0 %16 }
  0x82   :  { %v24_v10 = vrot.slane %v17_v8, %v23_v7 }
  0x84   :  { %v26_v11 = vmul.f32 %v24_v10, %v12_v9 }
  0x86   :  { %27 = vst [vmem:[#allocation2] sm:$0xf] %v26_v11 }
  0x87   :  { %57 = shalt.err (!%p54_p4)
}
  0x88   :  { %s58_s17 = scalar_lea.hbm %s108_s2, 64 }
  0x89   :  { %p59_p5 = scmp.ne.s32.totalorder %s108_s2, %s58_s17  ;;  %p62_p6 = scmp.lt.u32.totalorder %s58_s17, %s108_s2 }
  0x8b   :  { %p64_p7 = pnand %p62_p6, %p59_p5 }
  0x8d   :  { %67 = shalt.err (!%p64_p7)
}
  0x8e   :  { %37 = dma.vmem_to_hbm [thread:$0]  %s35_s14, 64, %s108_s2, [#allocation3]  }
  0x8f   :  { %68 = dma.done.wait [#allocation3], 64  }
  0x90   :  { %69 = vsyncadd [#allocation3], 4294967232 }
  0x91   :  { %41 = vsyncpa [#allocation3], 1 }

</bundles_post_ra>
